<compile_context>
chip_gen: v7x
topology: tpu7x:2x2x1
jax: 0.10.0
libtpu: 0.0.40
codegen_flags: <defaults>
</compile_context>

<pallas_src>
import functools
import math

import jax
import jax.numpy as jnp
from jax.experimental import pallas as pl
from jax.experimental.pallas import tpu as pltpu


def _round_up(n, m):
    return -(-n // m) * m


def _gauss_ansatz_kernel(x_ref, t_ref, mus_ref, us_ref, ust_ref, lam_ref,
                         exp_e_ref, exp_d_ref, out_ref, *, log_sigma):
    # In-kernel f32 cast: the HBM->VMEM DMA carries the native input dtype.
    x = x_ref[...].astype(jnp.float32)          # (TILE, F*D)
    t = t_ref[...].astype(jnp.float32)          # (TILE, F)
    mus = mus_ref[...]                          # (1, F*D)    resident
    us = us_ref[...]                            # (F*D, F*E)  resident (block-diag)
    ust = ust_ref[...]                          # (F*E, F*D)  resident (block-diag)
    lam = lam_ref[...]                          # (1, F*E)    resident, exp() hoisted
    exp_e = exp_e_ref[...]                      # (F, F*E)    0/1 group expander
    exp_d = exp_d_ref[...]                      # (F, F*D)    0/1 group expander

    two_log_sigma = jnp.float32(2.0 * log_sigma)
    # marginal_prob_std(t)^2 = (sigma^(2t) - 1) / (2 * log(sigma))
    sigma2 = (jnp.exp(two_log_sigma * t) - 1.0) / two_log_sigma      # (TILE, F)
    inv_sigma2 = pl.reciprocal(sigma2, approx=False)                 # (TILE, F)

    # Broadcast per-original-row scalars to their lane groups via tiny MXU
    # matmuls with one-hot expansion matrices (no cross-lane shuffles).
    sigma2_e = jnp.dot(sigma2, exp_e,
                       preferred_element_type=jnp.float32)           # (TILE, F*E)
    inv_sigma2_d = jnp.dot(inv_sigma2, exp_d,
                           preferred_element_type=jnp.float32)       # (TILE, F*D)

    residuals = x - mus                                              # (TILE, F*D)
    lam_tilde = lam * pl.reciprocal(lam + sigma2_e, approx=False)    # (TILE, F*E)

    rot = jnp.dot(residuals, us,
                  preferred_element_type=jnp.float32)                # (TILE, F*E)
    back = jnp.dot(rot * lam_tilde, ust,
                   preferred_element_type=jnp.float32)               # (TILE, F*D)

    out_ref[...] = ((back - residuals) * inv_sigma2_d).astype(out_ref.dtype)


def gauss_ansatz_forward(x, t, mus, Us, logLambdas, *, sigma=5.0,
                         tile_rows=None):
    """x: (B, D), t: (B,). Returns score_vecs (B, D) float32."""
    B, D = x.shape
    E = Us.shape[1]

    # Lane-folding factor: pack F rows of D features into the 128-lane dim.
    F = 128 // D if (D < 128 and 128 % D == 0) else 1

    # Pad the batch only up to a multiple of F (<= F-1 rows).
    B_pad = _round_up(B, F)
    t2d = t.reshape(B, 1)
    if B_pad != B:
        x = jnp.pad(x, ((0, B_pad - B), (0, 0)))
        t2d = jnp.pad(t2d, ((0, B_pad - B), (0, 0)), constant_values=1.0)
    Bf = B_pad // F

    # Row-major folds: free relayouts (metadata-only) in XLA.
    x_f = x.reshape(Bf, F * D)
    t_f = t2d.reshape(Bf, F)

    f32 = jnp.float32
    eye_f = jnp.eye(F, dtype=f32)
    mus_f = jnp.tile(mus.reshape(1, D).astype(f32), (1, F))              # (1, F*D)
    lam_f = jnp.tile(jnp.exp(logLambdas).reshape(1, E).astype(f32),
                     (1, F))                                             # (1, F*E)
    us_bd = jnp.kron(eye_f, Us.astype(f32))                              # (F*D, F*E)
    us_bd_t = us_bd.T                                                    # (F*E, F*D)
    exp_e = jnp.kron(eye_f, jnp.ones((1, E), f32))                       # (F, F*E)
    exp_d = jnp.kron(eye_f, jnp.ones((1, D), f32))                       # (F, F*D)

    # Batch tile over folded rows: big enough to amortize per-step overhead
    # (2048 folded rows == 8192 original rows, ~1 MiB x-tile), capped so large
    # batches still get >= 2 grid steps for megacore sharding on v7x.
    if tile_rows is None:
        tile_rows = _round_up(Bf, 8)
        if tile_rows > 2048:
            tile_rows = min(2048, _round_up(pl.cdiv(Bf, 2), 8))
    tile_rows = max(8, _round_up(int(tile_rows), 8))
    grid = (pl.cdiv(Bf, tile_rows),)

    in_bytes = (x_f.size * x_f.dtype.itemsize + t_f.size * t_f.dtype.itemsize
                + mus_f.size * 4 + us_bd.size * 8 + lam_f.size * 4
                + exp_e.size * 4 + exp_d.size * 4)
    out_bytes = Bf * F * D * 4
    cost = pl.CostEstimate(
        flops=4 * B_pad * D * E + 4 * B_pad * (E + D),
        transcendentals=B_pad,
        bytes_accessed=in_bytes + out_bytes)

    kernel = functools.partial(_gauss_ansatz_kernel,
                               log_sigma=math.log(float(sigma)))

    out_f = pl.pallas_call(
        kernel,
        out_shape=jax.ShapeDtypeStruct((Bf, F * D), jnp.float32),
        grid=grid,
        in_specs=[
            pl.BlockSpec((tile_rows, F * D), lambda i: (i, 0)),  # x      (tiled)
            pl.BlockSpec((tile_rows, F), lambda i: (i, 0)),      # t      (tiled)
            pl.BlockSpec((1, F * D), lambda i: (0, 0)),          # mus    (resident)
            pl.BlockSpec((F * D, F * E), lambda i: (0, 0)),      # Us     block-diag
            pl.BlockSpec((F * E, F * D), lambda i: (0, 0)),      # Us^T   block-diag
            pl.BlockSpec((1, F * E), lambda i: (0, 0)),          # exp(logLambdas)
            pl.BlockSpec((F, F * E), lambda i: (0, 0)),          # E-group expander
            pl.BlockSpec((F, F * D), lambda i: (0, 0)),          # D-group expander
        ],
        out_specs=pl.BlockSpec((tile_rows, F * D), lambda i: (i, 0)),
        compiler_params=pltpu.CompilerParams(
            dimension_semantics=("parallel",)),
        cost_estimate=cost,
    )(x_f, t_f, mus_f, us_bd, us_bd_t, lam_f, exp_e, exp_d)

    out = out_f.reshape(B_pad, D)
    return out[:B] if B_pad != B else out


def gauss_ansatz_reference(x, t, mus, Us, logLambdas, *, sigma=5.0):
    """Pure-JAX reference mirroring the PyTorch forward."""
    log_sigma = jnp.log(jnp.float32(sigma))
    std = jnp.sqrt((sigma ** (2.0 * t) - 1.0) / 2.0 / log_sigma)  # (B,)
    residuals = x - mus[None, :]
    lam = jnp.exp(logLambdas)[None, :]
    lam_tilde = lam / (lam + std[:, None] ** 2)
    rot = jnp.einsum('BD,DE->BE', residuals, Us)
    compo = -residuals + jnp.einsum('BE,DE->BD', rot * lam_tilde, Us)
    return compo / std[:, None] ** 2


if __name__ == "__main__":
    # Small shapes consistent with the module: batch=8, ndim=32, n_rank=16.
    B, D, E = 8, 32, 16
    SIGMA = 5.0

    key = jax.random.PRNGKey(0)
    k_mus, k_us, k_lam, k_x, k_t = jax.random.split(key, 5)

    # Deterministic parameter init mirroring __init__:
    mus = jax.random.normal(k_mus, (D,), dtype=jnp.float32)
    mus = mus / jnp.linalg.norm(mus, axis=-1, keepdims=True)
    Us = jax.random.normal(k_us, (D, E), dtype=jnp.float32)
    Us = Us / jnp.linalg.norm(Us, axis=-2, keepdims=True)
    logLambdas = jax.random.normal(k_lam, (E,), dtype=jnp.float32)

    # Inputs (avoid t near 0: std -> 0 is numerically unstable by design).
    x = jax.random.normal(k_x, (B, D), dtype=jnp.float32)
    t = jax.random.uniform(k_t, (B,), dtype=jnp.float32,
                           minval=0.1, maxval=1.0)

    out = gauss_ansatz_forward(x, t, mus, Us, logLambdas, sigma=SIGMA)
    out = jax.block_until_ready(out)

    ref = gauss_ansatz_reference(x, t, mus, Us, logLambdas, sigma=SIGMA)
    assert out.shape == (B, D)
    max_err = jnp.max(jnp.abs(out - ref))
    assert jnp.allclose(out, ref, atol=1e-4, rtol=1e-4), (
        f"max abs err {max_err}")

    print("KERNEL_OK")
</pallas_src>

<mosaic_0001>
module attributes {stable_mosaic.version = 11 : i64} {
  func.func @_gauss_ansatz_kernel(%arg0: i32, %arg1: memref<8x128xf32, #tpu.memory_space<vmem>>, %arg2: memref<8x4xf32, #tpu.memory_space<vmem>>, %arg3: memref<1x128xf32, #tpu.memory_space<vmem>>, %arg4: memref<128x64xf32, #tpu.memory_space<vmem>>, %arg5: memref<64x128xf32, #tpu.memory_space<vmem>>, %arg6: memref<1x64xf32, #tpu.memory_space<vmem>>, %arg7: memref<4x64xf32, #tpu.memory_space<vmem>>, %arg8: memref<4x128xf32, #tpu.memory_space<vmem>>, %arg9: memref<8x128xf32, #tpu.memory_space<vmem>>) attributes {dimension_semantics = [#tpu.dimension_semantics<parallel>], iteration_bounds = array<i64: 1>, scalar_prefetch = 0 : i64, scratch_operands = 0 : i64, tpu.core_type = #tpu.core_type<tc>, window_params = [{transform_indices = @transform_0, window_bounds = array<i64: 8, 128>}, {transform_indices = @transform_1, window_bounds = array<i64: 8, 4>}, {pipeline_mode = #tpu.pipeline_mode<synchronous>, transform_indices = @transform_2, window_bounds = array<i64: 1, 128>}, {pipeline_mode = #tpu.pipeline_mode<synchronous>, transform_indices = @transform_3, window_bounds = array<i64: 128, 64>}, {pipeline_mode = #tpu.pipeline_mode<synchronous>, transform_indices = @transform_4, window_bounds = array<i64: 64, 128>}, {pipeline_mode = #tpu.pipeline_mode<synchronous>, transform_indices = @transform_5, window_bounds = array<i64: 1, 64>}, {pipeline_mode = #tpu.pipeline_mode<synchronous>, transform_indices = @transform_6, window_bounds = array<i64: 4, 64>}, {pipeline_mode = #tpu.pipeline_mode<synchronous>, transform_indices = @transform_7, window_bounds = array<i64: 4, 128>}, {transform_indices = @transform_8, window_bounds = array<i64: 8, 128>}]} {
    %c0 = arith.constant 0 : index
    %c0_0 = arith.constant 0 : index
    %0 = vector.load %arg1[%c0, %c0_0] : memref<8x128xf32, #tpu.memory_space<vmem>>, vector<8x128xf32>
    %c0_1 = arith.constant 0 : index
    %c0_2 = arith.constant 0 : index
    %1 = vector.load %arg2[%c0_1, %c0_2] : memref<8x4xf32, #tpu.memory_space<vmem>>, vector<8x4xf32>
    %c0_3 = arith.constant 0 : index
    %c0_4 = arith.constant 0 : index
    %2 = vector.load %arg3[%c0_3, %c0_4] : memref<1x128xf32, #tpu.memory_space<vmem>>, vector<1x128xf32>
    %c0_5 = arith.constant 0 : index
    %c0_6 = arith.constant 0 : index
    %3 = vector.load %arg4[%c0_5, %c0_6] : memref<128x64xf32, #tpu.memory_space<vmem>>, vector<128x64xf32>
    %c0_7 = arith.constant 0 : index
    %c0_8 = arith.constant 0 : index
    %4 = vector.load %arg5[%c0_7, %c0_8] : memref<64x128xf32, #tpu.memory_space<vmem>>, vector<64x128xf32>
    %c0_9 = arith.constant 0 : index
    %c0_10 = arith.constant 0 : index
    %5 = vector.load %arg6[%c0_9, %c0_10] : memref<1x64xf32, #tpu.memory_space<vmem>>, vector<1x64xf32>
    %c0_11 = arith.constant 0 : index
    %c0_12 = arith.constant 0 : index
    %6 = vector.load %arg7[%c0_11, %c0_12] : memref<4x64xf32, #tpu.memory_space<vmem>>, vector<4x64xf32>
    %c0_13 = arith.constant 0 : index
    %c0_14 = arith.constant 0 : index
    %7 = vector.load %arg8[%c0_13, %c0_14] : memref<4x128xf32, #tpu.memory_space<vmem>>, vector<4x128xf32>
    %cst = arith.constant 3.21887589 : f32
    %8 = vector.broadcast %cst : f32 to vector<8x4xf32>
    %9 = arith.mulf %8, %1 : vector<8x4xf32>
    %10 = math.exp %9 : vector<8x4xf32>
    %cst_15 = arith.constant 1.000000e+00 : f32
    %11 = vector.broadcast %cst_15 : f32 to vector<8x4xf32>
    %12 = arith.subf %10, %11 : vector<8x4xf32>
    %cst_16 = arith.constant 3.21887589 : f32
    %13 = vector.broadcast %cst_16 : f32 to vector<8x4xf32>
    %14 = arith.divf %12, %13 : vector<8x4xf32>
    %15 = tpu.reciprocal %14 : vector<8x4xf32> -> vector<8x4xf32>
    %cst_17 = arith.constant dense<0.000000e+00> : vector<8x64xf32>
    %16 = tpu.matmul %14, %6, %cst_17 {dimension_numbers = #tpu.dot_dimension_numbers<[1], [0], [0], [1], [0, 0, 1, 1], [], []>} : vector<8x4xf32>, vector<4x64xf32>, vector<8x64xf32> -> vector<8x64xf32>
    %cst_18 = arith.constant dense<0.000000e+00> : vector<8x128xf32>
    %17 = tpu.matmul %15, %7, %cst_18 {dimension_numbers = #tpu.dot_dimension_numbers<[1], [0], [0], [1], [0, 0, 1, 1], [], []>} : vector<8x4xf32>, vector<4x128xf32>, vector<8x128xf32> -> vector<8x128xf32>
    %18 = vector.broadcast %2 : vector<1x128xf32> to vector<8x128xf32>
    %19 = arith.subf %0, %18 : vector<8x128xf32>
    %20 = vector.broadcast %5 : vector<1x64xf32> to vector<8x64xf32>
    %21 = arith.addf %20, %16 : vector<8x64xf32>
    %22 = tpu.reciprocal %21 : vector<8x64xf32> -> vector<8x64xf32>
    %23 = vector.broadcast %5 : vector<1x64xf32> to vector<8x64xf32>
    %24 = arith.mulf %23, %22 : vector<8x64xf32>
    %cst_19 = arith.constant dense<0.000000e+00> : vector<8x64xf32>
    %25 = tpu.matmul %19, %3, %cst_19 {dimension_numbers = #tpu.dot_dimension_numbers<[1], [0], [0], [1], [0, 0, 1, 1], [], []>} : vector<8x128xf32>, vector<128x64xf32>, vector<8x64xf32> -> vector<8x64xf32>
    %26 = arith.mulf %25, %24 : vector<8x64xf32>
    %cst_20 = arith.constant dense<0.000000e+00> : vector<8x128xf32>
    %27 = tpu.matmul %26, %4, %cst_20 {dimension_numbers = #tpu.dot_dimension_numbers<[1], [0], [0], [1], [0, 0, 1, 1], [], []>} : vector<8x64xf32>, vector<64x128xf32>, vector<8x128xf32> -> vector<8x128xf32>
    %28 = arith.subf %27, %19 : vector<8x128xf32>
    %29 = arith.mulf %28, %17 : vector<8x128xf32>
    %c0_21 = arith.constant 0 : index
    %c0_22 = arith.constant 0 : index
    %30 = vector.load %arg9[%c0_21, %c0_22] : memref<8x128xf32, #tpu.memory_space<vmem>>, vector<8x128xf32>
    tpu.vector_store %arg9[%c0_21, %c0_22], %29 {strides = array<i32>} : memref<8x128xf32, #tpu.memory_space<vmem>>, vector<8x128xf32>,
    return
  }
  func.func @transform_0(%arg0: i32) -> (i32, i32) {
    %c0_i32 = arith.constant 0 : i32
    %c0_i32_0 = arith.constant 0 : i32
    return %arg0, %c0_i32 : i32, i32
  }
  func.func @transform_1(%arg0: i32) -> (i32, i32) {
    %c0_i32 = arith.constant 0 : i32
    %c0_i32_0 = arith.constant 0 : i32
    return %arg0, %c0_i32 : i32, i32
  }
  func.func @transform_2(%arg0: i32) -> (i32, i32) {
    %c0_i32 = arith.constant 0 : i32
    %c0_i32_0 = arith.constant 0 : i32
    %c0_i32_1 = arith.constant 0 : i32
    return %c0_i32, %c0_i32_0 : i32, i32
  }
  func.func @transform_3(%arg0: i32) -> (i32, i32) {
    %c0_i32 = arith.constant 0 : i32
    %c0_i32_0 = arith.constant 0 : i32
    %c0_i32_1 = arith.constant 0 : i32
    return %c0_i32, %c0_i32_0 : i32, i32
  }
  func.func @transform_4(%arg0: i32) -> (i32, i32) {
    %c0_i32 = arith.constant 0 : i32
    %c0_i32_0 = arith.constant 0 : i32
    %c0_i32_1 = arith.constant 0 : i32
    return %c0_i32, %c0_i32_0 : i32, i32
  }
  func.func @transform_5(%arg0: i32) -> (i32, i32) {
    %c0_i32 = arith.constant 0 : i32
    %c0_i32_0 = arith.constant 0 : i32
    %c0_i32_1 = arith.constant 0 : i32
    return %c0_i32, %c0_i32_0 : i32, i32
  }
  func.func @transform_6(%arg0: i32) -> (i32, i32) {
    %c0_i32 = arith.constant 0 : i32
    %c0_i32_0 = arith.constant 0 : i32
    %c0_i32_1 = arith.constant 0 : i32
    return %c0_i32, %c0_i32_0 : i32, i32
  }
  func.func @transform_7(%arg0: i32) -> (i32, i32) {
    %c0_i32 = arith.constant 0 : i32
    %c0_i32_0 = arith.constant 0 : i32
    %c0_i32_1 = arith.constant 0 : i32
    return %c0_i32, %c0_i32_0 : i32, i32
  }
  func.func @transform_8(%arg0: i32) -> (i32, i32) {
    %c0_i32 = arith.constant 0 : i32
    %c0_i32_0 = arith.constant 0 : i32
    return %arg0, %c0_i32 : i32, i32
  }
}

</mosaic_0001>

<bundles_post_ra>
// kernel: tpu_custom_call.1
= control target key start
LH: loop header
LB: loop body
LE: loop exit
PB: predicated region body
PF: predicated region fallthrough
CT: control target
= control target key end

     0   :  { %v575_v3 = vmov 0.0|0.0   ;;  %v576_v6 = vmov 0.0   ;;  %vm71_vm0 = vcmask 1043456   ;;  %s754_s0 = inlined_call_operand.vmem [shape: f32[2,128], index: 0, kind: input, shape index: {}]   ;;  %s755_s1 = inlined_call_operand.vmem [shape: f32[2,4], index: 1, kind: input, shape index: {}]   ;;  %s756_s2 = inlined_call_operand.vmem [shape: f32[1,128], index: 2, kind: input, shape index: {}]   ;;  %s757_s3 = inlined_call_operand.vmem [shape: f32[128,64], index: 3, kind: input, shape index: {}]   ;;  %s758_s4 = inlined_call_operand.vmem [shape: f32[64,128], index: 4, kind: input, shape index: {}]   ;;  %s759_s5 = inlined_call_operand.vmem [shape: f32[1,64], index: 5, kind: input, shape index: {}]   ;;  %s760_s6 = inlined_call_operand.vmem [shape: f32[4,64], index: 6, kind: input, shape index: {}]   ;;  %s761_s7 = inlined_call_operand.vmem [shape: f32[4,128], index: 7, kind: input, shape index: {}]   ;;  %s762_s8 = inlined_call_operand.hbm [shape: f32[2,128], index: 8, kind: output, shape index: {}]  }
   0x1   :  { %v33_v0 = vld [vmem:[%s757_s3] sm:$0xff]  ;;  %v34_v1 = vld [vmem:[%s757_s3 + $0x8] sm:$0xff]  ;;  %v35_v2 = vld [vmem:[%s757_s3 + $0x10] sm:$0xff]  ;;  %503 = vmatprep.subr.bf16.mxu0 %v575_v3  ;;  %439 = vmatprep.subr.mxu1 %v576_v6 }
   0x2   :  { %v504_v4 = vpack.c.bf16 %v34_v1, %v33_v0  ;;  %v36_v5 = vld [vmem:[%s757_s3 + $0x18] sm:$0xff] }
   0x3   :  { %13 = vsyncpa [#allocation3], 0  ;;  %vm577_vm1 = vmmov 0   ;;  %v507_v7 = vpack.c.bf16 %v36_v5, %v35_v2  ;;  %v58_v8 = vld [vmem:[%s760_s6] sm:$0xf]  ;;  %v38_v10 = vld [vmem:[%s757_s3 + $0x28] sm:$0xff] }
   0x4   :  { %441 = vmatprep.mubr.msk.f32.mxu1 %vm577_vm1, %v576_v6  ;;  %481 = vmatprep.mubr.msk.f32.mxu0 %vm577_vm1, %v576_v6  ;;  %v37_v9 = vld [vmem:[%s757_s3 + $0x20] sm:$0xff]  ;;  %v39_v15 = vld [vmem:[%s757_s3 + $0x30] sm:$0xff]  ;;  %v40_v16 = vld [vmem:[%s757_s3 + $0x38] sm:$0xff]  ;;  %vm67_vm2 = vcmask 31744   ;;  %vm308_vm3 = vcmask 523264  }
   0x5   :  { %505 = vmatpush3.bf16.msra.mxu0 %v504_v4  ;;  %440 = vmatpush3.msk.msra.mxu1 %vm71_vm0, %v58_v8  ;;  %v31_v11 = vld [vmem:[%s755_s1] sm:$0xff]  ;;  %v510_v13 = vpack.c.bf16 %v38_v10, %v37_v9  ;;  %v513_v17 = vpack.c.bf16 %v40_v16, %v39_v15  ;;  %v42_v19 = vld [vmem:[%s757_s3 + $0x48] sm:$0xff]  ;;  %v43_v21 = vld [vmem:[%s757_s3 + $0x50] sm:$0xff] }
   0x6   :  { %506 = vmatprep.subr.bf16.mxu0 %v575_v3  ;;  %v60_v12 = vmul.f32 3.218876, %v31_v11  ;;  %444 = vmatprep.subr.mxu1 %v576_v6  ;;  %v41_v18 = vld [vmem:[%s757_s3 + $0x40] sm:$0xff]  ;;  %v44_v22 = vld [vmem:[%s757_s3 + $0x58] sm:$0xff]  ;;  %v46_v27 = vld [vmem:[%s757_s3 + $0x68] sm:$0xff] }
   0x7   :  { %v516_v20 = vpack.c.bf16 %v42_v19, %v41_v18  ;;  %v519_v24 = vpack.c.bf16 %v44_v22, %v43_v21  ;;  %v45_v26 = vld [vmem:[%s757_s3 + $0x60] sm:$0xff]  ;;  %v47_v31 = vld [vmem:[%s757_s3 + $0x70] sm:$0xff]  ;;  %v48_v32 = vld [vmem:[%s757_s3 + $0x78] sm:$0xff] }
   0x8   :  { %v61_v14 = vmul.f32 1.442695, %v60_v12  ;;  %v59_v29 = vld [vmem:[%s761_s7] sm:$0xf]  ;;  %v522_v30 = vpack.c.bf16 %v46_v27, %v45_v26  ;;  %v525_v33 = vpack.c.bf16 %v48_v32, %v47_v31  ;;  %v50_v39 = vld [vmem:[%s758_s4 + $0x8] sm:$0xff]  ;;  %v51_v41 = vld [vmem:[%s758_s4 + $0x10] sm:$0xff] }
   0x9   :  { %508 = vmatpush3.bf16.msra.mxu0 %v507_v7  ;;  %v30_v34 = vld [vmem:[%s754_s0] sm:$0xff]  ;;  %v52_v42 = vld [vmem:[%s758_s4 + $0x18] sm:$0xff]  ;;  %v54_v45 = vld [vmem:[%s758_s4 + $0x28] sm:$0xff] }
   0xa   :  { %509 = vmatprep.subr.bf16.mxu0 %v575_v3  ;;  %545 = vpow2.f32 %v61_v14  ;;  %v406_v35 = vld [vmem:[%s756_s2] ss:$0 sm:$0xff]  ;;  %v531_v43 = vpack.c.bf16 %v52_v42, %v51_v41  ;;  %v55_v47 = vld [vmem:[%s758_s4 + $0x30] sm:$0xff]  ;;  %v56_v48 = vld [vmem:[%s758_s4 + $0x38] sm:$0xff] }
   0xb   :  { %v227_v36 = vsub.f32 %v30_v34, %v406_v35  ;;  %v49_v38 = vld [vmem:[%s758_s4] sm:$0xff]  ;;  %v537_v49 = vpack.c.bf16 %v56_v48, %v55_v47 }
   0xc   :  { %v528_v40 = vpack.c.bf16 %v50_v39, %v49_v38  ;;  %v53_v44 = vld [vmem:[%s758_s4 + $0x20] sm:$0xff] }
   0xd   :  { %511 = vmatpush3.bf16.msra.mxu0 %v510_v13  ;;  %v534_v46 = vpack.c.bf16 %v54_v45, %v53_v44  ;;  %v407_v50 = vld [vmem:[%s759_s5] ss:$0 sm:$0xff] }
   0xe   :  { %512 = vmatprep.subr.bf16.mxu0 %v575_v3 }
  0x11   :  { %514 = vmatpush3.bf16.msra.mxu0 %v513_v17 }
  0x12   :  { %515 = vmatprep.subr.bf16.mxu0 %v575_v3 }
  0x14   :  { %v546_v23 = vpop.eup %545 }
  0x15   :  { %517 = vmatpush3.bf16.msra.mxu0 %v516_v20  ;;  %v401_v25 = vadd.f32 -1.0, %v546_v23 }
  0x16   :  { %518 = vmatprep.subr.bf16.mxu0 %v575_v3 }
  0x17   :  { %v65_v28 = vmul.f32 0.31066746, %v401_v25 }
  0x19   :  { %520 = vmatpush3.bf16.msra.mxu0 %v519_v24  ;;  %547 = vrcp.f32 %v65_v28  ;;  %442 = vmatmul.mubr.msk.f32.vlgmr.msra.gmra.mrb[0].mxu1 %vm67_vm2, %v65_v28 }
  0x1a   :  { %521 = vmatprep.subr.bf16.mxu0 %v575_v3  ;;  %445 = vmatpush3.msk.msra.mxu1 %vm71_vm0, %v59_v29 }
  0x1b   :  { %446 = vmatprep.mubr.msk.f32.mxu1 %vm577_vm1, %v576_v6  ;;  %527 = vmatprep.subr.bf16.mxu1 %v575_v3 }
  0x1d   :  { %523 = vmatpush3.bf16.msra.mxu0 %v522_v30 }
  0x1e   :  { %524 = vmatprep.subr.bf16.mxu0 %v575_v3 }
  0x21   :  { %526 = vmatpush3.bf16.msra.mxu0 %v525_v33 }
  0x23   :  { %v548_v37 = vpop.eup %547 }
  0x24   :  { %482 = vmatmul.mubr.f32.vlgmr.msra.gmra.mrb[0].mxu0 %v227_v36  ;;  %447 = vmatmul.mubr.msk.f32.vlgmr.msra.gmra.mrb[2].mxu1 %vm67_vm2, %v548_v37 }
  0x25   :  { %500 = vmatprep.mubr.msk.f32.mxu1 %vm577_vm1, %v576_v6  ;;  %529 = vmatpush3.bf16.msra.mxu1 %v528_v40 }
  0x26   :  { %530 = vmatprep.subr.bf16.mxu1 %v575_v3 }
  0x29   :  { %532 = vmatpush3.bf16.msra.mxu1 %v531_v43 }
  0x2a   :  { %533 = vmatprep.subr.bf16.mxu1 %v575_v3 }
  0x2d   :  { %535 = vmatpush3.bf16.msra.mxu1 %v534_v46 }
  0x2e   :  { %536 = vmatprep.subr.bf16.mxu1 %v575_v3 }
  0x31   :  { %538 = vmatpush3.bf16.msra.mxu1 %v537_v49 }
  0xec   :  { %v141_v51 = vpop.f32.mrb[0].mxu1 }
  0xed   :  { %v234_v52 = vadd.f32 %v407_v50, %v141_v51  ;;  %v443_v53 = vpop.f32.mrb[1].mxu1 }
  0xef   :  { %549 = vrcp.f32 %v234_v52 }
  0xf7   :  { %v303_v54 = vpop.f32.mrb[0].mxu0  ;;  %v217_v56 = vpop.f32.mrb[2].mxu1 }
  0xf8   :  { %v483_v55 = vpop.f32.mrb[1].mxu0  ;;  %v448_v57 = vpop.f32.mrb[3].mxu1 }
  0xf9   :  { %v550_v58 = vpop.eup %549 }
  0xfa   :  { %v236_v59 = vmul.f32 %v550_v58, %v407_v50 }
  0xfc   :  { %v307_v60 = vmul.f32 %v303_v54, %v236_v59 }
  0xfe   :  { %501 = vmatmul.mubr.msk.f32.vlgmr.msra.gmra.mrb[4].mxu1 %vm308_vm3, %v307_v60 }
 0x1d1   :  { %v378_v61 = vpop.f32.mrb[4].mxu1 }
 0x1d2   :  { %v382_v62 = vsub.f32 %v378_v61, %v227_v36  ;;  %v502_v63 = vpop.f32.mrb[5].mxu1 }
 0x1d4   :  { %v383_v0 = vmul.f32 %v382_v62, %v217_v56 }
 0x1d6   :  { %384 = vst [vmem:[#allocation2] sm:$0xff] %v383_v0 }
 0x1d7   :  { %389 = vsyncadd [#allocation3], 96  ;;  %s578_s4 = smov [#allocation2]  }
 0x1d8   :  { %s390_s5 = sshll.u32 %s578_s4, 4  ;;  %s391_s5 = int_to_ptr.vmem [resolvable:$true] %s390_s5 }
 0x1d9   :  { %s551_s13 = scalar_lea.vmem %s391_s5, 32  ;;  %s555_s14 = scalar_lea.vmem %s391_s5, 128 }
 0x1da   :  { %p552_p0 = scmp.ne.s32.totalorder %s391_s5, %s551_s13  ;;  %p556_p1 = scmp.lt.s32.totalorder %s391_s5, %s391_s5 }
 0x1db   :  { %p557_p2 = scmp.lt.s32.totalorder %s555_s14, %s551_s13 }
 0x1dd   :  { %p558_p3 = por %p557_p2, %p556_p1 }
 0x1df   :  { %p559_p4 = pnand %p558_p3, %p552_p0 }
 0x1e1   :  { %562 = shalt.err (!%p559_p4)
}
 0x1e2   :  { %s563_s17 = scalar_lea.hbm %s762_s8, 32 }
 0x1e3   :  { %p564_p5 = scmp.ne.s32.totalorder %s762_s8, %s563_s17  ;;  %p567_p6 = scmp.lt.u32.totalorder %s563_s17, %s762_s8 }
 0x1e5   :  { %p569_p7 = pnand %p567_p6, %p564_p5 }
 0x1e7   :  { %572 = shalt.err (!%p569_p7)
}
 0x1e8   :  { %s579_s6 = smov 32   ;;  %s580_s3 = smov 2  }
 0x1e9   :  { %396 = dma.vmem_to_hbm [thread:$0]  %s391_s5, 32, %s762_s8, [#allocation3], %s579_s6, %s579_s6, %s580_s3  }
 0x1ea   :  { %573 = dma.done.wait [#allocation3], 128  }
 0x1eb   :  { %574 = vsyncadd [#allocation3], 4294967168 }
 0x1ec   :  { %400 = vsyncpa [#allocation3], 1 }

</bundles_post_ra>
